<compile_context>
chip_gen: v7x
topology: tpu7x:2x2x1
jax: 0.10.0
libtpu: 0.0.40
codegen_flags: <defaults>
</compile_context>

<pallas_src>
import functools

import jax
import jax.numpy as jnp
from jax.experimental import pallas as pl
from jax.experimental.pallas import tpu as pltpu


def _l2norm_kernel(x_ref, scale_ref, o_ref, *, eps: float):
    x = x_ref[...].astype(jnp.float32)                   # (bn, C, T)
    sq_sum = jnp.sum(x * x, axis=1, keepdims=True)       # (bn, 1, T) channel reduction
    # eps added AFTER sqrt, exactly like the PyTorch module.
    inv = pl.reciprocal(jnp.sqrt(sq_sum) + eps, approx=False)   # exact: keeps 1e-5 tol
    scale = scale_ref[...].astype(jnp.float32)            # (C, 1) broadcasts over (bn, C, T)
    o_ref[...] = (x * inv * scale).astype(o_ref.dtype)


def _round_up(v: int, m: int) -> int:
    return (v + m - 1) // m * m


def _largest_divisor_le(n: int, cap: int) -> int:
    cap = max(1, min(n, cap))
    for d in range(cap, 0, -1):
        if n % d == 0:
            return d
    return 1


def _tpu_budget():
    """Returns (vmem_limit_bytes, per-block byte budget, #TensorCores sharing the grid)."""
    physical = 64 << 20                     # conservative fallback == v7x per-TC VMEM
    try:
        physical = int(getattr(pltpu.get_tpu_info(), "vmem_capacity_bytes", physical))
    except Exception:
        pass
    # Leave 1/4 of physical VMEM for the compiler; v5e/v6e -> 96 MiB, v7x -> 48 MiB.
    vmem_limit = min(physical * 3 // 4, 96 << 20)
    # Working set ~= 2 buffers x (in + out) + ~3x f32 temps ~= 7x one block, so
    # budgeting 1/12 of the scoped limit (4 MiB on v7x, 8 MiB on v5e/v6e) is safe.
    block_budget = max(1 << 20, vmem_limit // 12)
    n_tc = 1
    try:
        kind = jax.devices()[0].device_kind.lower()
        if ("v7" in kind) or ("v4" in kind) or ("v5p" in kind):
            n_tc = 2                        # 2 TensorCores share "parallel" grid dims
    except Exception:
        pass
    return vmem_limit, block_budget, n_tc


def _plan_blocks(N, C, HW, itemsize, block_budget, n_tc):
    """Pick (bn, tile_hw, grid_b, grid_s): multi-MiB blocks that fit the VMEM budget."""
    hw128 = _round_up(HW, 128)
    # Budget-driven spatial tile (multiple of 128); no artificial column cap.
    cols_cap = max(128, (block_budget // max(C * itemsize, 1)) // 128 * 128)
    tile_hw = min(cols_cap, hw128)
    bn = 1
    if tile_hw >= hw128:
        # One (padded) image fits in a single block -> pack several images per block.
        tile_hw = hw128
        per_image = C * hw128 * itemsize
        bn = _largest_divisor_le(N, max(1, block_budget // max(per_image, 1)))

    grid_b = N // bn                         # exact: bn divides N
    grid_s = pl.cdiv(HW, tile_hw)            # ragged last spatial block is fine

    if n_tc >= 2:
        # Make sure both TensorCores get at least one grid step.
        if grid_b * grid_s < 2:
            if bn >= 2:
                bn = _largest_divisor_le(N, bn // 2)
                grid_b = N // bn
            elif tile_hw >= 256:
                cand = _round_up(pl.cdiv(HW, 2), 128)
                if pl.cdiv(HW, cand) >= 2:
                    tile_hw = cand
                    grid_s = pl.cdiv(HW, tile_hw)
        # Prefer an even total step count so the two TCs stay load-balanced.
        if (grid_b * grid_s) % 2 == 1 and grid_s > 1:
            cand = _round_up(pl.cdiv(HW, grid_s + 1), 128)
            if cand >= 128 and (grid_b * pl.cdiv(HW, cand)) % 2 == 0:
                tile_hw = cand
                grid_s = pl.cdiv(HW, tile_hw)

    return bn, tile_hw, grid_b, grid_s


def l2norm(x, scale, eps=1e-5):
    """x: (N, C, H, W); scale: per-channel rescale, shape (C,) or (1, C, 1, 1)."""
    N, C, H, W = x.shape
    HW = H * W
    itemsize = jnp.dtype(x.dtype).itemsize   # bf16 stays bf16 on the HBM path

    vmem_limit, block_budget, n_tc = _tpu_budget()
    bn, tile_hw, grid_b, grid_s = _plan_blocks(N, C, HW, itemsize, block_budget, n_tc)

    x2 = x.reshape(N, C, HW)                 # spatial -> fast lane axis (no pad, no copy)
    scale2 = jnp.asarray(scale).reshape(-1)
    assert scale2.shape[0] == C, "scale must have C elements"
    scale2 = scale2.reshape(C, 1)

    out = pl.pallas_call(
        functools.partial(_l2norm_kernel, eps=float(eps)),
        out_shape=jax.ShapeDtypeStruct((N, C, HW), x.dtype),
        grid_spec=pltpu.PrefetchScalarGridSpec(
            num_scalar_prefetch=0,
            grid=(grid_b, grid_s),
            in_specs=[
                pl.BlockSpec((bn, C, tile_hw), lambda b, s: (b, 0, s)),
                pl.BlockSpec((C, 1), lambda b, s: (0, 0)),
            ],
            out_specs=pl.BlockSpec((bn, C, tile_hw), lambda b, s: (b, 0, s)),
        ),
        compiler_params=pltpu.CompilerParams(
            dimension_semantics=("parallel", "parallel"),
            vmem_limit_bytes=int(vmem_limit),
        ),
    )(x2, scale2)

    return out.reshape(N, C, H, W)


def l2norm_reference(x, scale, eps=1e-5):
    # Pure-JAX reference matching the PyTorch forward exactly (f32 math).
    xf = x.astype(jnp.float32)
    norm = jnp.sqrt(jnp.sum(xf * xf, axis=1, keepdims=True)) + eps
    return jnp.asarray(scale, jnp.float32).reshape(1, -1, 1, 1) * (xf / norm)


if __name__ == "__main__":
    key = jax.random.PRNGKey(0)
    initial = 20.0   # nn.init.constant_(scale, initial=20)

    # Case 1: small aligned demo shape (N=2, C=4, 16x16).
    x = jax.random.normal(key, (2, 4, 16, 16), dtype=jnp.float32)
    s = jnp.full((4,), initial, dtype=jnp.float32)
    out = jax.block_until_ready(l2norm(x, s, eps=1e-5))
    ref = l2norm_reference(x, s, eps=1e-5)
    assert out.shape == x.shape
    assert jnp.allclose(out, ref, atol=1e-5, rtol=1e-5), "mismatch (aligned)"

    # Case 2: ragged spatial extent (SSD 19x19) -> exercises the dropped-OOB-write path.
    k1, k2, k3 = jax.random.split(key, 3)
    x2 = jax.random.normal(k1, (1, 8, 19, 19), dtype=jnp.float32)
    s2 = jnp.full((8,), initial, dtype=jnp.float32)
    out2 = jax.block_until_ready(l2norm(x2, s2, eps=1e-5))
    ref2 = l2norm_reference(x2, s2, eps=1e-5)
    assert out2.shape == x2.shape
    assert jnp.allclose(out2, ref2, atol=1e-5, rtol=1e-5), "mismatch (ragged)"

    # Case 3: batch-packed blocks (N=4, tiny per-image footprint).
    x3 = jax.random.normal(k2, (4, 4, 16, 16), dtype=jnp.float32)
    out3 = jax.block_until_ready(l2norm(x3, s, eps=1e-5))
    ref3 = l2norm_reference(x3, s, eps=1e-5)
    assert jnp.allclose(out3, ref3, atol=1e-5, rtol=1e-5), "mismatch (batched blocks)"

    # Case 4: bf16 passthrough (bf16 HBM traffic, f32 math inside the kernel).
    x4 = jax.random.normal(k3, (2, 8, 19, 19), dtype=jnp.bfloat16)
    out4 = jax.block_until_ready(l2norm(x4, s2, eps=1e-5))
    assert out4.dtype == jnp.bfloat16
    ref4 = l2norm_reference(x4, s2, eps=1e-5)
    assert jnp.allclose(out4.astype(jnp.float32), ref4, atol=2e-2, rtol=2e-2), "mismatch (bf16)"

    print("KERNEL_OK")
</pallas_src>

<mosaic_0001>
module attributes {stable_mosaic.version = 11 : i64} {
  func.func @_l2norm_kernel(%arg0: i32, %arg1: i32, %arg2: memref<2x4x256xf32, #tpu.memory_space<vmem>>, %arg3: memref<4x1xf32, #tpu.memory_space<vmem>>, %arg4: memref<2x4x256xf32, #tpu.memory_space<vmem>>) attributes {dimension_semantics = [#tpu.dimension_semantics<parallel>, #tpu.dimension_semantics<parallel>], iteration_bounds = array<i64: 1, 1>, scalar_prefetch = 0 : i64, scratch_operands = 0 : i64, tpu.core_type = #tpu.core_type<tc>, window_params = [{transform_indices = @transform_0, window_bounds = array<i64: 2, 4, 256>}, {pipeline_mode = #tpu.pipeline_mode<synchronous>, transform_indices = @transform_1, window_bounds = array<i64: 4, 1>}, {transform_indices = @transform_2, window_bounds = array<i64: 2, 4, 256>}]} {
    %c0 = arith.constant 0 : index
    %c0_0 = arith.constant 0 : index
    %c0_1 = arith.constant 0 : index
    %0 = vector.load %arg2[%c0, %c0_0, %c0_1] : memref<2x4x256xf32, #tpu.memory_space<vmem>>, vector<2x4x256xf32>
    %1 = arith.mulf %0, %0 : vector<2x4x256xf32>
    %cst = arith.constant dense<0.000000e+00> : vector<2x256xf32>
    %2 = vector.multi_reduction <add>, %1, %cst [1] : vector<2x4x256xf32> to vector<2x256xf32>
    %3 = vector.shape_cast %2 : vector<2x256xf32> to vector<2x1x256xf32>
    %4 = math.sqrt %3 : vector<2x1x256xf32>
    %cst_2 = arith.constant 9.99999974E-6 : f32
    %5 = vector.broadcast %cst_2 : f32 to vector<2x1x256xf32>
    %6 = arith.addf %4, %5 : vector<2x1x256xf32>
    %7 = tpu.reciprocal %6 : vector<2x1x256xf32> -> vector<2x1x256xf32>
    %c0_3 = arith.constant 0 : index
    %c0_4 = arith.constant 0 : index
    %8 = vector.load %arg3[%c0_3, %c0_4] : memref<4x1xf32, #tpu.memory_space<vmem>>, vector<4x1xf32>
    %9 = vector.broadcast %7 : vector<2x1x256xf32> to vector<2x4x256xf32>
    %10 = arith.mulf %0, %9 : vector<2x4x256xf32>
    %11 = vector.shape_cast %8 : vector<4x1xf32> to vector<1x4x1xf32>
    %12 = vector.broadcast %11 : vector<1x4x1xf32> to vector<2x4x256xf32>
    %13 = arith.mulf %10, %12 : vector<2x4x256xf32>
    %c0_5 = arith.constant 0 : index
    %c0_6 = arith.constant 0 : index
    %c0_7 = arith.constant 0 : index
    %14 = vector.load %arg4[%c0_5, %c0_6, %c0_7] : memref<2x4x256xf32, #tpu.memory_space<vmem>>, vector<2x4x256xf32>
    tpu.vector_store %arg4[%c0_5, %c0_6, %c0_7], %13 {strides = array<i32>} : memref<2x4x256xf32, #tpu.memory_space<vmem>>, vector<2x4x256xf32>,
    return
  }
  func.func @transform_0(%arg0: i32, %arg1: i32) -> (i32, i32, i32) {
    %c0_i32 = arith.constant 0 : i32
    %c0_i32_0 = arith.constant 0 : i32
    return %arg0, %c0_i32, %arg1 : i32, i32, i32
  }
  func.func @transform_1(%arg0: i32, %arg1: i32) -> (i32, i32) {
    %c0_i32 = arith.constant 0 : i32
    %c0_i32_0 = arith.constant 0 : i32
    %c0_i32_1 = arith.constant 0 : i32
    return %c0_i32, %c0_i32_0 : i32, i32
  }
  func.func @transform_2(%arg0: i32, %arg1: i32) -> (i32, i32, i32) {
    %c0_i32 = arith.constant 0 : i32
    %c0_i32_0 = arith.constant 0 : i32
    return %arg0, %c0_i32, %arg1 : i32, i32, i32
  }
}

</mosaic_0001>

<bundles_post_ra>
// kernel: tpu_custom_call.1
= control target key start
LH: loop header
LB: loop body
LE: loop exit
PB: predicated region body
PF: predicated region fallthrough
CT: control target
= control target key end

     0   :  { %7 = vsyncpa [#allocation3], 0  ;;  %s280_s0 = inlined_call_operand.hbm [shape: f32[2,4,256], index: 0, kind: input, shape index: {}]   ;;  %s281_s1 = inlined_call_operand.vmem [shape: f32[4,1], index: 1, kind: input, shape index: {}]   ;;  %s282_s2 = inlined_call_operand.hbm [shape: f32[2,4,256], index: 2, kind: output, shape index: {}]  }
   0x1   :  { %8 = vsyncpa [#allocation4], 0  ;;  %s216_s9 = smov [#allocation2]   ;;  %s168_s13 = scalar_lea.hbm %s280_s0, 256 }
   0x2   :  { %s14_s10 = sshll.u32 %s216_s9, 4  ;;  %p169_p0 = scmp.ne.s32.totalorder %s280_s0, %s168_s13  ;;  %s15_s10 = int_to_ptr.vmem [resolvable:$true] %s14_s10 }
   0x3   :  { %p172_p1 = scmp.lt.u32.totalorder %s168_s13, %s280_s0 }
   0x5   :  { %p174_p2 = pnand %p172_p1, %p169_p0 }
   0x7   :  { %177 = shalt.err (!%p174_p2)
}
   0x8   :  { %s178_s18 = scalar_lea.vmem %s15_s10, 256  ;;  %p183_p4 = scmp.lt.s32.totalorder %s15_s10, %s15_s10 }
   0x9   :  { %p179_p3 = scmp.ne.s32.totalorder %s15_s10, %s178_s18  ;;  %p184_p5 = scmp.lt.s32.totalorder %s178_s18, %s178_s18 }
   0xb   :  { %p185_p6 = por %p184_p5, %p183_p4 }
   0xd   :  { %p186_p7 = pnand %p185_p6, %p179_p3 }
   0xf   :  { %189 = shalt.err (!%p186_p7)
}
  0x10   :  { %s217_s19 = smov 128   ;;  %s218_s20 = smov 8  }
  0x11   :  { %20 = dma.hbm_to_vmem [thread:$0]  %s280_s0, 256, %s15_s10, [#allocation3], %s217_s19, %s217_s19, %s218_s20  }
  0x12   :  { %212 = dma.done.wait [#allocation3], 256  }
  0x13   :  { %213 = vsyncadd [#allocation3], 4294967040  ;;  %v219_v0 = vmov 0   ;;  %v101_v1 = vld [vmem:[%s281_s1] sm:$0xf]  ;;  %v257_v3 = vld [vmem:[#allocation2 + $0x8] sm:$0xff]  ;;  %v119_v63 = vlaneseq }
  0x14   :  { %151 = vset.pattern.permute.xlu0 %v219_v0  ;;  %v255_v2 = vld [vmem:[#allocation2] sm:$0xff]  ;;  %v29_v5 = vmul.f32 %v257_v3, %v257_v3  ;;  %vm36_vm0 = vcmask 1043456   ;;  %v220_v61 = vmov 839922192   ;;  %s221_s0 = smov [#allocation5]  }
  0x15   :  { %114 = vperm.xlu0 %151, %v101_v1   ;;  %v28_v4 = vmul.f32 %v255_v2, %v255_v2  ;;  %v117_v62 = vunpack.c.l.s4 %v220_v61  ;;  %s133_s1 = sshll.u32 %s221_s0, 4  ;;  %s134_s1 = int_to_ptr.vmem [resolvable:$true] %s133_s1 }
  0x16   :  { %v33_v7 = vcombine.high %v29_v5, %v29_v5  ;;  %v51_v9 = vsel %vm36_vm0, %v29_v5, 0.0  ;;  %s190_s25 = scalar_lea.vmem %s134_s1, 256  ;;  %p195_p9 = scmp.lt.s32.totalorder %s134_s1, %s134_s1 }
  0x17   :  { %v32_v6 = vcombine.high %v28_v4, %v28_v4  ;;  %v37_v8 = vsel %vm36_vm0, %v28_v4, 0.0  ;;  %v52_v13 = vrot.slane %v51_v9, 4  ;;  %v118_v5 = vunpack.c.0.s8 %v117_v62  ;;  %p191_p8 = scmp.ne.s32.totalorder %s134_s1, %s190_s25  ;;  %p196_p10 = scmp.lt.s32.totalorder %s190_s25, %s190_s25 }
  0x18   :  { %v38_v11 = vrot.slane %v37_v8, 4  ;;  %v58_v12 = vsel %vm36_vm0, %v33_v7, 0.0 }
  0x19   :  { %v44_v10 = vsel %vm36_vm0, %v32_v6, 0.0  ;;  %v59_v15 = vrot.slane %v58_v12, 4  ;;  %v53_v17 = vadd.f32 %v52_v13, %v51_v9  ;;  %v120_v6 = vshrl.u32 %v119_v63, 7  ;;  %p197_p11 = por %p196_p10, %p195_p9 }
  0x1a   :  { %v45_v14 = vrot.slane %v44_v10, 4  ;;  %v39_v16 = vadd.f32 %v38_v11, %v37_v8 }
  0x1b   :  { %v60_v19 = vadd.f32 %v59_v15, %v58_v12  ;;  %v54_v21 = vrot.slane %v53_v17, 2  ;;  %v121_v9 = vsub.s32 %v118_v5, %v120_v6  ;;  %p198_p12 = pnand %p197_p11, %p191_p8 }
  0x1c   :  { %v46_v18 = vadd.f32 %v45_v14, %v44_v10  ;;  %v40_v20 = vrot.slane %v39_v16, 2 }
  0x1d   :  { %v61_v23 = vrot.slane %v60_v19, 2  ;;  %v55_v25 = vadd.f32 %v54_v21, %v53_v17 }
  0x1e   :  { %v47_v22 = vrot.slane %v46_v18, 2  ;;  %v41_v24 = vadd.f32 %v40_v20, %v39_v16 }
  0x1f   :  { %v62_v27 = vadd.f32 %v61_v23, %v60_v19  ;;  %v56_v29 = vrot.slane %v55_v25, 1 }
  0x20   :  { %v48_v26 = vadd.f32 %v47_v22, %v46_v18  ;;  %v42_v28 = vrot.slane %v41_v24, 1 }
  0x21   :  { %v63_v31 = vrot.slane %v62_v27, 1  ;;  %v57_v33 = vadd.f32 %v56_v29, %v55_v25 }
  0x22   :  { %v49_v30 = vrot.slane %v48_v26, 1  ;;  %v43_v32 = vadd.f32 %v42_v28, %v41_v24 }
  0x23   :  { %v64_v35 = vadd.f32 %v63_v31, %v62_v27  ;;  %vm81_vm2 = vcmp.eq.f32.partialorder %v57_v33, inf  ;;  %v84_v46 = vand.u32 2147483648, %v57_v33  ;;  %vm83_vm6 = vcmp.eq.f32.partialorder %v57_v33, 0.0 }
  0x24   :  { %v50_v34 = vadd.f32 %v49_v30, %v48_v26  ;;  %152 = vrsqrt.f32 %v43_v32  ;;  %vm67_vm1 = vcmp.eq.f32.partialorder %v43_v32, inf  ;;  %v70_v43 = vand.u32 2147483648, %v43_v32 }
  0x25   :  { %154 = vrsqrt.f32 %v57_v33  ;;  %vm69_vm4 = vcmp.eq.f32.partialorder %v43_v32, 0.0  ;;  %vm88_vm5 = vcmp.eq.f32.partialorder %v64_v35, inf  ;;  %v91_v50 = vand.u32 2147483648, %v64_v35 }
  0x26   :  { %156 = vrsqrt.f32 %v50_v34  ;;  %vm74_vm3 = vcmp.eq.f32.partialorder %v50_v34, inf  ;;  %v77_v47 = vand.u32 2147483648, %v50_v34  ;;  %vm76_vm7 = vcmp.eq.f32.partialorder %v50_v34, 0.0 }
  0x27   :  { %158 = vrsqrt.f32 %v64_v35  ;;  %vm90_vm8 = vcmp.eq.f32.partialorder %v64_v35, 0.0 }
  0x2e   :  { %v153_v36 = vpop.eup %152 }
  0x2f   :  { %v155_v37 = vpop.eup %154  ;;  %v66_v40 = vmul.f32 %v153_v36, %v43_v32 }
  0x30   :  { %v157_v38 = vpop.eup %156  ;;  %v80_v41 = vmul.f32 %v155_v37, %v57_v33 }
  0x31   :  { %v159_v39 = vpop.eup %158  ;;  %v73_v42 = vmul.f32 %v157_v38, %v50_v34  ;;  %v68_v45 = vsel %vm67_vm1, %v43_v32, %v66_v40 }
  0x32   :  { %v87_v44 = vmul.f32 %v159_v39, %v64_v35  ;;  %v82_v48 = vsel %vm81_vm2, %v57_v33, %v80_v41  ;;  %v71_v51 = vsel %vm69_vm4, %v70_v43, %v68_v45 }
  0x33   :  { %v75_v49 = vsel %vm74_vm3, %v50_v34, %v73_v42  ;;  %v85_v53 = vsel %vm83_vm6, %v84_v46, %v82_v48  ;;  %v93_v56 = vadd.f32 1e-05, %v71_v51 }
  0x34   :  { %v89_v52 = vsel %vm88_vm5, %v64_v35, %v87_v44  ;;  %v78_v54 = vsel %vm76_vm7, %v77_v47, %v75_v49  ;;  %v95_v57 = vadd.f32 1e-05, %v85_v53 }
  0x35   :  { %v92_v55 = vsel %vm90_vm8, %v91_v50, %v89_v52  ;;  %v94_v58 = vadd.f32 1e-05, %v78_v54  ;;  %160 = vrcp.f32 %v93_v56 }
  0x36   :  { %v96_v59 = vadd.f32 1e-05, %v92_v55  ;;  %162 = vrcp.f32 %v95_v57 }
  0x37   :  { %164 = vrcp.f32 %v94_v58 }
  0x38   :  { %166 = vrcp.f32 %v96_v59 }
  0x3f   :  { %v161_v60 = vpop.eup %160 }
  0x40   :  { %v163_v0 = vpop.eup %162 }
  0x41   :  { %v165_v1 = vpop.eup %164 }
  0x42   :  { %v167_v4 = vpop.eup %166  ;;  %v106_v7 = vcombine.low %v161_v60, %v165_v1 }
  0x43   :  { %v107_v8 = vcombine.low %v163_v0, %v167_v4 }
  0x44   :  { %v110_v10 = vmul.f32 %v106_v7, %v255_v2 }
  0x45   :  { %v111_v11 = vmul.f32 %v107_v8, %v257_v3 }
  0x94   :  { %v115_v12 = vpop.permute.xlu0 %114 }
  0x95   :  { %v122_v13 = vrot.slane %v115_v12, %v121_v9 }
  0x97   :  { %v124_v14 = vmul.f32 %v122_v13, %v110_v10  ;;  %v125_v15 = vmul.f32 %v122_v13, %v111_v11 }
  0x99   :  { %126 = vst [vmem:[#allocation5] sm:$0xff] %v124_v14  ;;  %127 = vst [vmem:[#allocation5 + $0x8] sm:$0xff] %v125_v15 }
  0x9a   :  { %201 = shalt.err (!%p198_p12)
}
  0x9b   :  { %s202_s28 = scalar_lea.hbm %s282_s2, 256 }
  0x9c   :  { %p203_p13 = scmp.ne.s32.totalorder %s282_s2, %s202_s28  ;;  %p206_p0 = scmp.lt.u32.totalorder %s202_s28, %s282_s2 }
  0x9e   :  { %p208_p1 = pnand %p206_p0, %p203_p13 }
  0xa0   :  { %211 = shalt.err (!%p208_p1)
}
  0xa1   :  { %139 = dma.vmem_to_hbm [thread:$0]  %s134_s1, 256, %s282_s2, [#allocation4], %s217_s19, %s217_s19, %s218_s20  }
  0xa2   :  { %214 = dma.done.wait [#allocation4], 256  }
  0xa3   :  { %215 = vsyncadd [#allocation4], 4294967040 }
  0xa4   :  { %143 = vsyncpa [#allocation3], 1 }
  0xa5   :  { %144 = vsyncpa [#allocation4], 1 }

</bundles_post_ra>
